<compile_context>
chip_gen: v6e
topology: v6e:2x2x1
jax: 0.10.0
libtpu: 0.0.40
codegen_flags: <defaults>
</compile_context>

<pallas_src>
import math

import jax
import jax.numpy as jnp
from jax.experimental import pallas as pl
from jax.experimental.pallas import tpu as pltpu


def geognn_block_kernel(x_ref, adj_ref, eagg_ref, w1_ref, b1_ref, w2_ref, p_ref, out_ref):
    eps = 1e-5
    x = x_ref[...]                              # (N, D)

    # packed per-channel parameter slab (one DMA): rows = b2, ln_g, ln_b, gn_a, gn_g, gn_b
    b2 = p_ref[0:1, :]
    ln_g = p_ref[1:2, :]
    ln_b = p_ref[2:3, :]
    gn_a = p_ref[3:4, :]
    gn_g = p_ref[4:5, :]
    gn_b = p_ref[5:6, :]

    # ---- GINConv aggregation: agg_i = sum_{e: dst=i} (x[src[e]] + edge_attr[e])
    #      = (adj @ x)_i + eagg_i   (adjacency carries edge multiplicity)
    agg = jnp.dot(adj_ref[...], x, preferred_element_type=jnp.float32) + eagg_ref[...]

    # ---- GIN MLP: Linear(D, 2D) -> ReLU -> Linear(2D, D)
    h = jnp.dot(agg, w1_ref[...], preferred_element_type=jnp.float32) + b1_ref[...]
    h = jnp.maximum(h, 0.0)
    h = jnp.dot(h, w2_ref[...], preferred_element_type=jnp.float32) + b2

    # ---- LayerNorm (mode='graph'): stats over all nodes AND channels of this graph.
    #      Fused single pass: var = E[h^2] - E[h]^2; PyG divides by (std + eps).
    mu = jnp.mean(h)
    var = jnp.maximum(jnp.mean(h * h) - mu * mu, 0.0)
    h = (h - mu) * (1.0 / (jnp.sqrt(var) + eps))
    h = h * ln_g + ln_b

    # ---- GraphNorm: per-channel graph stats with learnable mean-scale alpha (fused pass).
    m1 = jnp.mean(h, axis=0, keepdims=True)          # (1, D)
    m2 = jnp.mean(h * h, axis=0, keepdims=True)      # (1, D)
    c = h - gn_a * m1
    var_c = jnp.maximum(m2 - (2.0 * gn_a - gn_a * gn_a) * m1 * m1, 0.0)  # E[c^2]
    h = gn_g * c * jax.lax.rsqrt(var_c + eps) + gn_b

    # ---- last_act = True: exact GELU (erf based, matching torch.nn.GELU())
    h = 0.5 * h * (1.0 + jax.lax.erf(h * (1.0 / math.sqrt(2.0))))

    # ---- Dropout: identity at inference.  Residual connection.
    out_ref[...] = (h + x).astype(out_ref.dtype)


def init_params(key, embed_dim):
    k1, k2 = jax.random.split(key, 2)
    d, h = embed_dim, 2 * embed_dim
    return dict(
        w1=jax.random.normal(k1, (d, h), jnp.float32) / math.sqrt(d),
        b1=jnp.zeros((1, h), jnp.float32),
        w2=jax.random.normal(k2, (h, d), jnp.float32) / math.sqrt(h),
        b2=jnp.zeros((1, d), jnp.float32),
        ln_gamma=jnp.ones((1, d), jnp.float32),
        ln_beta=jnp.zeros((1, d), jnp.float32),
        gn_alpha=jnp.ones((1, d), jnp.float32),   # mean_scale
        gn_gamma=jnp.ones((1, d), jnp.float32),
        gn_beta=jnp.zeros((1, d), jnp.float32),
    )


def geognn_block(x, edge_index, edge_attr, params):
    """x: (B,N,D) nodes, edge_index: (B,2,E) int32 [src; dst], edge_attr: (B,E,D)."""
    B, N, D = x.shape
    E = edge_attr.shape[1]
    src = edge_index[:, 0, :]                                   # (B, E)
    dst = edge_index[:, 1, :]                                   # (B, E)
    bidx = jnp.arange(B, dtype=edge_index.dtype)[:, None]       # (B, 1)

    # Precompute once per forward (cheap XLA scatter-adds) so the kernel never
    # touches O(E*N) one-hot operands:
    #   adj[b,i,j]  = number of edges j -> i           (exact small ints)
    #   eagg[b,i,:] = sum of edge_attr over edges into i
    adj = jnp.zeros((B, N, N), x.dtype).at[bidx, dst, src].add(1.0)
    eagg = jnp.zeros((B, N, D), x.dtype).at[bidx, dst].add(edge_attr)

    # Pack the six (1, D) per-channel parameter vectors into one (8, D) slab.
    pslab = jnp.concatenate(
        [params["b2"], params["ln_gamma"], params["ln_beta"],
         params["gn_alpha"], params["gn_gamma"], params["gn_beta"],
         jnp.zeros((2, D), x.dtype)],
        axis=0)                                                  # (8, D)

    # Advisory cost estimate (matmuls dominate; erf counted as transcendental).
    flops = int(B * (2 * N * N * D + 8 * N * D * D))
    bytes_accessed = int(4 * (3 * B * N * D + B * N * N          # x, eagg, out, adj
                              + 4 * D * D + 2 * D + 8 * D        # w1, w2, b1, pslab
                              + B * N * D))                      # x re-read for residual
    cost = pl.CostEstimate(flops=flops, transcendentals=int(B * N * D),
                           bytes_accessed=bytes_accessed)

    out = pl.pallas_call(
        geognn_block_kernel,
        out_shape=jax.ShapeDtypeStruct((B, N, D), x.dtype),
        grid=(B,),
        in_specs=[
            pl.BlockSpec((None, N, D), lambda b: (b, 0, 0)),     # x        (per graph)
            pl.BlockSpec((None, N, N), lambda b: (b, 0, 0)),     # adjacency(per graph)
            pl.BlockSpec((None, N, D), lambda b: (b, 0, 0)),     # eagg     (per graph)
            pl.BlockSpec((D, 2 * D), lambda b: (0, 0)),          # w1   (shared, no re-DMA)
            pl.BlockSpec((1, 2 * D), lambda b: (0, 0)),          # b1
            pl.BlockSpec((2 * D, D), lambda b: (0, 0)),          # w2
            pl.BlockSpec((8, D), lambda b: (0, 0)),              # param slab
        ],
        out_specs=pl.BlockSpec((None, N, D), lambda b: (b, 0, 0)),
        compiler_params=pltpu.CompilerParams(
            dimension_semantics=("parallel",)),                  # both TCs on v7x
        cost_estimate=cost,
    )(x, adj, eagg, params["w1"], params["b1"], params["w2"], pslab)
    return out
    # TODO(synk): optional `pe` (positional-encoding) branch of GINConv not specified in
    #             the reference source; only the pe=None forward path is implemented.
    # TODO(synk): graphs with ragged node/edge counts would need masks / true divisors in
    #             the LayerNorm & GraphNorm statistics; this version assumes unpadded graphs.


if __name__ == "__main__":
    key = jax.random.PRNGKey(0)
    B, N, E, D = 4, 32, 96, 128   # graphs, nodes/graph, edges/graph, embed_dim (lane-dense)
    k0, k1, k2, k3 = jax.random.split(key, 4)

    x = jax.random.normal(k0, (B, N, D), jnp.float32)
    edge_index = jax.random.randint(k1, (B, 2, E), 0, N, dtype=jnp.int32)
    edge_attr = jax.random.normal(k2, (B, E, D), jnp.float32)
    params = init_params(k3, D)

    out = jax.jit(geognn_block)(x, edge_index, edge_attr, params)
    jax.block_until_ready(out)
    assert out.shape == (B, N, D) and out.dtype == jnp.float32
    print("KERNEL_OK")
</pallas_src>

<mosaic_0001>
module attributes {stable_mosaic.version = 11 : i64} {
  func.func private @main(%arg0: i32) attributes {dimension_semantics = [#tpu.dimension_semantics<core_parallel>], iteration_bounds = array<i64: 2>, tpu.core_type = #tpu.core_type<sc_scalar_subcore>, window_params = []} {
    return
  }
}

module attributes {stable_mosaic.version = 11 : i64} {
  func.func private @main(%arg0: i32) attributes {dimension_semantics = [#tpu.dimension_semantics<core_parallel>], iteration_bounds = array<i64: 2>, tpu.core_type = #tpu.core_type<sc_scalar_subcore>, window_params = []} {
    return
  }
}

module attributes {stable_mosaic.version = 11 : i64} {
  func.func @geognn_block_kernel(%arg0: i32, %arg1: memref<1x32x128xf32, #tpu.memory_space<vmem>>, %arg2: memref<1x32x32xf32, #tpu.memory_space<vmem>>, %arg3: memref<1x32x128xf32, #tpu.memory_space<vmem>>, %arg4: memref<128x256xf32, #tpu.memory_space<vmem>>, %arg5: memref<1x256xf32, #tpu.memory_space<vmem>>, %arg6: memref<256x128xf32, #tpu.memory_space<vmem>>, %arg7: memref<8x128xf32, #tpu.memory_space<vmem>>, %arg8: memref<1x32x128xf32, #tpu.memory_space<vmem>>) attributes {dimension_semantics = [#tpu.dimension_semantics<parallel>], iteration_bounds = array<i64: 4>, scalar_prefetch = 0 : i64, scratch_operands = 0 : i64, tpu.core_type = #tpu.core_type<tc>, window_params = [{transform_indices = @transform_0, window_bounds = array<i64: 1, 32, 128>}, {transform_indices = @transform_1, window_bounds = array<i64: 1, 32, 32>}, {transform_indices = @transform_2, window_bounds = array<i64: 1, 32, 128>}, {pipeline_mode = #tpu.pipeline_mode<synchronous>, transform_indices = @transform_3, window_bounds = array<i64: 128, 256>}, {pipeline_mode = #tpu.pipeline_mode<synchronous>, transform_indices = @transform_4, window_bounds = array<i64: 1, 256>}, {pipeline_mode = #tpu.pipeline_mode<synchronous>, transform_indices = @transform_5, window_bounds = array<i64: 256, 128>}, {pipeline_mode = #tpu.pipeline_mode<synchronous>, transform_indices = @transform_6, window_bounds = array<i64: 8, 128>}, {transform_indices = @transform_7, window_bounds = array<i64: 1, 32, 128>}]} {
    %c0 = arith.constant 0 : index
    %c0_0 = arith.constant 0 : index
    %c0_1 = arith.constant 0 : index
    %0 = vector.load %arg1[%c0, %c0_0, %c0_1] : memref<1x32x128xf32, #tpu.memory_space<vmem>>, vector<1x32x128xf32>
    %1 = vector.shape_cast %0 : vector<1x32x128xf32> to vector<32x128xf32>
    %c0_2 = arith.constant 0 : index
    %c0_3 = arith.constant 0 : index
    %2 = vector.load %arg7[%c0_2, %c0_3] : memref<8x128xf32, #tpu.memory_space<vmem>>, vector<1x128xf32>
    %c1 = arith.constant 1 : index
    %c0_4 = arith.constant 0 : index
    %3 = vector.load %arg7[%c1, %c0_4] : memref<8x128xf32, #tpu.memory_space<vmem>>, vector<1x128xf32>
    %c2 = arith.constant 2 : index
    %c0_5 = arith.constant 0 : index
    %4 = vector.load %arg7[%c2, %c0_5] : memref<8x128xf32, #tpu.memory_space<vmem>>, vector<1x128xf32>
    %c3 = arith.constant 3 : index
    %c0_6 = arith.constant 0 : index
    %5 = vector.load %arg7[%c3, %c0_6] : memref<8x128xf32, #tpu.memory_space<vmem>>, vector<1x128xf32>
    %c4 = arith.constant 4 : index
    %c0_7 = arith.constant 0 : index
    %6 = vector.load %arg7[%c4, %c0_7] : memref<8x128xf32, #tpu.memory_space<vmem>>, vector<1x128xf32>
    %c5 = arith.constant 5 : index
    %c0_8 = arith.constant 0 : index
    %7 = vector.load %arg7[%c5, %c0_8] : memref<8x128xf32, #tpu.memory_space<vmem>>, vector<1x128xf32>
    %c0_9 = arith.constant 0 : index
    %c0_10 = arith.constant 0 : index
    %c0_11 = arith.constant 0 : index
    %8 = vector.load %arg2[%c0_9, %c0_10, %c0_11] : memref<1x32x32xf32, #tpu.memory_space<vmem>>, vector<1x32x32xf32>
    %9 = vector.shape_cast %8 : vector<1x32x32xf32> to vector<32x32xf32>
    %cst = arith.constant dense<0.000000e+00> : vector<32x128xf32>
    %10 = tpu.matmul %9, %1, %cst {dimension_numbers = #tpu.dot_dimension_numbers<[1], [0], [0], [1], [0, 0, 1, 1], [], []>} : vector<32x32xf32>, vector<32x128xf32>, vector<32x128xf32> -> vector<32x128xf32>
    %c0_12 = arith.constant 0 : index
    %c0_13 = arith.constant 0 : index
    %c0_14 = arith.constant 0 : index
    %11 = vector.load %arg3[%c0_12, %c0_13, %c0_14] : memref<1x32x128xf32, #tpu.memory_space<vmem>>, vector<1x32x128xf32>
    %12 = vector.shape_cast %11 : vector<1x32x128xf32> to vector<32x128xf32>
    %13 = arith.addf %10, %12 : vector<32x128xf32>
    %c0_15 = arith.constant 0 : index
    %c0_16 = arith.constant 0 : index
    %14 = vector.load %arg4[%c0_15, %c0_16] : memref<128x256xf32, #tpu.memory_space<vmem>>, vector<128x256xf32>
    %cst_17 = arith.constant dense<0.000000e+00> : vector<32x256xf32>
    %15 = tpu.matmul %13, %14, %cst_17 {dimension_numbers = #tpu.dot_dimension_numbers<[1], [0], [0], [1], [0, 0, 1, 1], [], []>} : vector<32x128xf32>, vector<128x256xf32>, vector<32x256xf32> -> vector<32x256xf32>
    %c0_18 = arith.constant 0 : index
    %c0_19 = arith.constant 0 : index
    %16 = vector.load %arg5[%c0_18, %c0_19] : memref<1x256xf32, #tpu.memory_space<vmem>>, vector<1x256xf32>
    %17 = vector.broadcast %16 : vector<1x256xf32> to vector<32x256xf32>
    %18 = arith.addf %15, %17 : vector<32x256xf32>
    %cst_20 = arith.constant 0.000000e+00 : f32
    %19 = vector.broadcast %cst_20 : f32 to vector<32x256xf32>
    %20 = arith.maximumf %18, %19 : vector<32x256xf32>
    %c0_21 = arith.constant 0 : index
    %c0_22 = arith.constant 0 : index
    %21 = vector.load %arg6[%c0_21, %c0_22] : memref<256x128xf32, #tpu.memory_space<vmem>>, vector<256x128xf32>
    %cst_23 = arith.constant dense<0.000000e+00> : vector<32x128xf32>
    %22 = tpu.matmul %20, %21, %cst_23 {dimension_numbers = #tpu.dot_dimension_numbers<[1], [0], [0], [1], [0, 0, 1, 1], [], []>} : vector<32x256xf32>, vector<256x128xf32>, vector<32x128xf32> -> vector<32x128xf32>
    %23 = vector.broadcast %2 : vector<1x128xf32> to vector<32x128xf32>
    %24 = arith.addf %22, %23 : vector<32x128xf32>
    %25 = vector.shape_cast %24 : vector<32x128xf32> to vector<1x32x128xf32>
    %cst_24 = arith.constant dense<0.000000e+00> : vector<1xf32>
    %26 = vector.multi_reduction <add>, %25, %cst_24 [1, 2] : vector<1x32x128xf32> to vector<1xf32>
    %27 = vector.shape_cast %26 : vector<1xf32> to vector<1x1x1xf32>
    %28 = vector.extract %27[0, 0, 0] : f32 from vector<1x1x1xf32>
    %cst_25 = arith.constant 4.096000e+03 : f32
    %29 = arith.divf %28, %cst_25 : f32
    %30 = arith.mulf %24, %24 : vector<32x128xf32>
    %31 = vector.shape_cast %30 : vector<32x128xf32> to vector<1x32x128xf32>
    %cst_26 = arith.constant dense<0.000000e+00> : vector<1xf32>
    %32 = vector.multi_reduction <add>, %31, %cst_26 [1, 2] : vector<1x32x128xf32> to vector<1xf32>
    %33 = vector.shape_cast %32 : vector<1xf32> to vector<1x1x1xf32>
    %34 = vector.extract %33[0, 0, 0] : f32 from vector<1x1x1xf32>
    %cst_27 = arith.constant 4.096000e+03 : f32
    %35 = arith.divf %34, %cst_27 : f32
    %36 = arith.mulf %29, %29 : f32
    %37 = arith.subf %35, %36 : f32
    %cst_28 = arith.constant 0.000000e+00 : f32
    %38 = arith.maximumf %37, %cst_28 : f32
    %39 = vector.broadcast %29 : f32 to vector<32x128xf32>
    %40 = arith.subf %24, %39 : vector<32x128xf32>
    %41 = math.sqrt %38 : f32
    %cst_29 = arith.constant 9.99999974E-6 : f32
    %42 = arith.addf %41, %cst_29 : f32
    %cst_30 = arith.constant 1.000000e+00 : f32
    %43 = arith.divf %cst_30, %42 : f32
    %44 = vector.broadcast %43 : f32 to vector<32x128xf32>
    %45 = arith.mulf %40, %44 : vector<32x128xf32>
    %46 = vector.broadcast %3 : vector<1x128xf32> to vector<32x128xf32>
    %47 = arith.mulf %45, %46 : vector<32x128xf32>
    %48 = vector.broadcast %4 : vector<1x128xf32> to vector<32x128xf32>
    %49 = arith.addf %47, %48 : vector<32x128xf32>
    %cst_31 = arith.constant dense<0.000000e+00> : vector<128xf32>
    %50 = vector.multi_reduction <add>, %49, %cst_31 [0] : vector<32x128xf32> to vector<128xf32>
    %51 = vector.shape_cast %50 : vector<128xf32> to vector<1x128xf32>
    %cst_32 = arith.constant 3.200000e+01 : f32
    %52 = vector.broadcast %cst_32 : f32 to vector<1x128xf32>
    %53 = arith.divf %51, %52 : vector<1x128xf32>
    %54 = arith.mulf %49, %49 : vector<32x128xf32>
    %cst_33 = arith.constant dense<0.000000e+00> : vector<128xf32>
    %55 = vector.multi_reduction <add>, %54, %cst_33 [0] : vector<32x128xf32> to vector<128xf32>
    %56 = vector.shape_cast %55 : vector<128xf32> to vector<1x128xf32>
    %cst_34 = arith.constant 3.200000e+01 : f32
    %57 = vector.broadcast %cst_34 : f32 to vector<1x128xf32>
    %58 = arith.divf %56, %57 : vector<1x128xf32>
    %59 = arith.mulf %5, %53 : vector<1x128xf32>
    %60 = vector.broadcast %59 : vector<1x128xf32> to vector<32x128xf32>
    %61 = arith.subf %49, %60 : vector<32x128xf32>
    %cst_35 = arith.constant 2.000000e+00 : f32
    %62 = vector.broadcast %cst_35 : f32 to vector<1x128xf32>
    %63 = arith.mulf %62, %5 : vector<1x128xf32>
    %64 = arith.mulf %5, %5 : vector<1x128xf32>
    %65 = arith.subf %63, %64 : vector<1x128xf32>
    %66 = arith.mulf %65, %53 : vector<1x128xf32>
    %67 = arith.mulf %66, %53 : vector<1x128xf32>
    %68 = arith.subf %58, %67 : vector<1x128xf32>
    %cst_36 = arith.constant 0.000000e+00 : f32
    %69 = vector.broadcast %cst_36 : f32 to vector<1x128xf32>
    %70 = arith.maximumf %68, %69 : vector<1x128xf32>
    %71 = vector.broadcast %6 : vector<1x128xf32> to vector<32x128xf32>
    %72 = arith.mulf %71, %61 : vector<32x128xf32>
    %cst_37 = arith.constant 9.99999974E-6 : f32
    %73 = vector.broadcast %cst_37 : f32 to vector<1x128xf32>
    %74 = arith.addf %70, %73 : vector<1x128xf32>
    %75 = math.rsqrt %74 : vector<1x128xf32>
    %76 = vector.broadcast %75 : vector<1x128xf32> to vector<32x128xf32>
    %77 = arith.mulf %72, %76 : vector<32x128xf32>
    %78 = vector.broadcast %7 : vector<1x128xf32> to vector<32x128xf32>
    %79 = arith.addf %77, %78 : vector<32x128xf32>
    %cst_38 = arith.constant 5.000000e-01 : f32
    %80 = vector.broadcast %cst_38 : f32 to vector<32x128xf32>
    %81 = arith.mulf %80, %79 : vector<32x128xf32>
    %cst_39 = arith.constant 0.707106769 : f32
    %82 = vector.broadcast %cst_39 : f32 to vector<32x128xf32>
    %83 = arith.mulf %79, %82 : vector<32x128xf32>
    %84 = math.erf %83 : vector<32x128xf32>
    %cst_40 = arith.constant 1.000000e+00 : f32
    %85 = vector.broadcast %cst_40 : f32 to vector<32x128xf32>
    %86 = arith.addf %85, %84 : vector<32x128xf32>
    %87 = arith.mulf %81, %86 : vector<32x128xf32>
    %88 = arith.addf %87, %1 : vector<32x128xf32>
    %c0_41 = arith.constant 0 : index
    %c0_42 = arith.constant 0 : index
    %c0_43 = arith.constant 0 : index
    %89 = vector.load %arg8[%c0_41, %c0_42, %c0_43] : memref<1x32x128xf32, #tpu.memory_space<vmem>>, vector<1x32x128xf32>
    %90 = vector.shape_cast %89 : vector<1x32x128xf32> to vector<32x128xf32>
    %91 = vector.shape_cast %88 : vector<32x128xf32> to vector<1x32x128xf32>
    tpu.vector_store %arg8[%c0_41, %c0_42, %c0_43], %91 {strides = array<i32>} : memref<1x32x128xf32, #tpu.memory_space<vmem>>, vector<1x32x128xf32>,
    return
  }
  func.func @transform_0(%arg0: i32) -> (i32, i32, i32) {
    %c0_i32 = arith.constant 0 : i32
    %c0_i32_0 = arith.constant 0 : i32
    %c0_i32_1 = arith.constant 0 : i32
    return %arg0, %c0_i32, %c0_i32_0 : i32, i32, i32
  }
  func.func @transform_1(%arg0: i32) -> (i32, i32, i32) {
    %c0_i32 = arith.constant 0 : i32
    %c0_i32_0 = arith.constant 0 : i32
    %c0_i32_1 = arith.constant 0 : i32
    return %arg0, %c0_i32, %c0_i32_0 : i32, i32, i32
  }
  func.func @transform_2(%arg0: i32) -> (i32, i32, i32) {
    %c0_i32 = arith.constant 0 : i32
    %c0_i32_0 = arith.constant 0 : i32
    %c0_i32_1 = arith.constant 0 : i32
    return %arg0, %c0_i32, %c0_i32_0 : i32, i32, i32
  }
  func.func @transform_3(%arg0: i32) -> (i32, i32) {
    %c0_i32 = arith.constant 0 : i32
    %c0_i32_0 = arith.constant 0 : i32
    %c0_i32_1 = arith.constant 0 : i32
    return %c0_i32, %c0_i32_0 : i32, i32
  }
  func.func @transform_4(%arg0: i32) -> (i32, i32) {
    %c0_i32 = arith.constant 0 : i32
    %c0_i32_0 = arith.constant 0 : i32
    %c0_i32_1 = arith.constant 0 : i32
    return %c0_i32, %c0_i32_0 : i32, i32
  }
  func.func @transform_5(%arg0: i32) -> (i32, i32) {
    %c0_i32 = arith.constant 0 : i32
    %c0_i32_0 = arith.constant 0 : i32
    %c0_i32_1 = arith.constant 0 : i32
    return %c0_i32, %c0_i32_0 : i32, i32
  }
  func.func @transform_6(%arg0: i32) -> (i32, i32) {
    %c0_i32 = arith.constant 0 : i32
    %c0_i32_0 = arith.constant 0 : i32
    %c0_i32_1 = arith.constant 0 : i32
    return %c0_i32, %c0_i32_0 : i32, i32
  }
  func.func @transform_7(%arg0: i32) -> (i32, i32, i32) {
    %c0_i32 = arith.constant 0 : i32
    %c0_i32_0 = arith.constant 0 : i32
    %c0_i32_1 = arith.constant 0 : i32
    return %arg0, %c0_i32, %c0_i32_0 : i32, i32, i32
  }
}

</mosaic_0001>

<bundles_post_ra>
// kernel: geognn_block.1
= control target key start
LH: loop header
LB: loop body
LE: loop exit
PB: predicated region body
PF: predicated region fallthrough
CT: control target
= control target key end

     0   :  { %12 = vsyncpa [#allocation3], 0  ;;  %s1751_s0 = inlined_call_operand.vmem [shape: f32[4,32,128], index: 0, kind: input, shape index: {}]   ;;  %s1752_s1 = inlined_call_operand.hbm [shape: f32[4,32,32], index: 1, kind: input, shape index: {}]   ;;  %s1753_s2 = inlined_call_operand.vmem [shape: f32[4,32,128], index: 2, kind: input, shape index: {}]   ;;  %s1754_s3 = inlined_call_operand.vmem [shape: f32[128,256], index: 3, kind: input, shape index: {}]   ;;  %s1755_s4 = inlined_call_operand.vmem [shape: f32[1,256], index: 4, kind: input, shape index: {}]   ;;  %s1756_s5 = inlined_call_operand.vmem [shape: f32[256,128], index: 5, kind: input, shape index: {}]   ;;  %s1757_s6 = inlined_call_operand.vmem [shape: f32[8,128], index: 6, kind: input, shape index: {}]   ;;  %s1758_s7 = inlined_call_operand.hbm [shape: f32[4,32,128], index: 7, kind: output, shape index: {}]  }
   0x1   :  { %14 = vsyncpa [#allocation3 + $0x1], 0 }
   0x2   :  { %15 = vsyncpa [#allocation4], 0 }
   0x3   :  { %17 = vsyncpa [#allocation4 + $0x1], 0  ;;  %s1310_s24 = smov 0   ;;  %s1312_s25 = smov 0  }
   0x4   :  { %s1314_s26 = smov 0   ;;  %s1316_s27 = smov 0  }
   0x5 LB: > { %s1331_s28 = sadd.s32 4294967295, %s1260_s27   ;;  %s997_s29 = sadd.s32 4294967294, %s1260_s27   ;;  %s1260_s27 = sphi %s1316_s27, %s1772_s27   ;;  %s1256_s26 = sphi %s1314_s26, %s1771_s26   ;;  %s1252_s25 = sphi %s1312_s25, %s1770_s25   ;;  %s1248_s24 = sphi %s1310_s24, %s1769_s24  }
   0x6   : > { %s1335_s30 = sadd.s32 1, %s1260_s27   ;;  %s56_s8 = sadd.s32 1, %s1256_s26 }
   0x7   : > { %s53_s9 = ssub.s32 %s1260_s27, %s1335_s30  ;;  %p63_p0 = scmp.ne.s32.totalorder %s1256_s26, %s1252_s25 }
   0x8   : > { %p54_p1 = scmp.eq.s32.totalorder %s53_s9, 0  ;;  %p64_p2 = scmp.eq.s32.totalorder %s1260_s27, 0 }
   0x9   : > { %p69_p3 = scmp.ne.s32.totalorder %s1252_s25, %s1248_s24  ;;  %p70_p4 = scmp.eq.s32.totalorder %s1331_s28, 0 }
   0xa   : > { %s1347_s10 = scalar_select %p54_p1, %s1256_s26, %s56_s8  }
   0xb   : > { %p1349_p5 = por %p64_p2, %p63_p0  ;;  %p1353_p6 = por %p70_p4, %p69_p3 }
   0xc   : > { %p203_p7 = scmp.eq.s32.totalorder %s1331_s28, 3  ;;  %p209_p8 = scmp.eq.s32.totalorder %s997_s29, 3 }
   0xd   : > { %s1762_s12 = scalar_select %p1353_p6, 1, 0 }
   0xe   : > { %p1114_p9 = scmp.lt.s32.totalorder %s1260_s27, 4  ;;  %p1359_p10 = por %p203_p7, %p63_p0 }
   0xf   : > { %p1363_p11 = por %p209_p8, %p69_p3  ;;  %s249_s15 = sand.u32 1, %s1256_s26  }
  0x10   : > { %s1763_s13 = scalar_select %p1359_p10, 1, 0 }
  0x11   : > { %s1764_s14 = scalar_select %p1363_p11, 1, 0 }
  0x12   : > { %s1024_s16 = sshll.u32 %s1260_s27, 9  ;;  %s1000_s17 = sshll.u32 %s249_s15, 5 }
  0x13   : > { %s1372_s20 = scalar_lea.hbm %s1752_s1, %s1024_s16  ;;  %s253_s21 = scalar_lea.vmem [#allocation2], %s1000_s17 }
  0x14   : > { %s260_s22 = sshll.u32 %s253_s21, 4  ;;  %p1376_p12 = pnand %p1114_p9, %p1349_p5  ;;  %s1380_s22 = int_to_ptr.vmem [resolvable:$true] %s260_s22 }
  0x15   : > { %s1382_s29 = scalar_lea.sflag [#allocation3], %s249_s15  ;;  %s1168_s8 = scalar_lea.hbm %s1372_s20, 512 }
  0x16   : > { %p1169_p13 = scmp.ne.s32.totalorder %s1372_s20, %s1168_s8  ;;  %p1170_p0 = pneg %p1376_p12 }
  0x17   : > { %s1173_s17 = scalar_lea.hbm %s1752_s1, 2048  ;;  %p1174_p3 = scmp.lt.s32.totalorder %s1372_s20, %s1752_s1 }
  0x18   : > { %p1171_p1 = pnand %p1170_p0, %p1169_p13  ;;  %p1175_p4 = scmp.lt.s32.totalorder %s1173_s17, %s1168_s8 }
  0x1a   : > { %p1172_p2 = pneg %p1171_p1  ;;  %p1176_p5 = por %p1175_p4, %p1174_p3 }
  0x1c   : > { %p1177_p7 = pnand %p1176_p5, %p1172_p2 }
  0x1e   : > { %1180 = shalt.err (!%p1177_p7)
}
  0x1f   : > { %s1181_s15 = scalar_lea.vmem %s1380_s22, 512  ;;  %s1262_s19 = smov [#allocation2]  }
  0x20   : > { %p1182_p8 = scmp.ne.s32.totalorder %s1380_s22, %s1181_s15  ;;  %s1186_s21 = sshll.u32 %s1262_s19, 4  ;;  %s1187_s21 = int_to_ptr.vmem [resolvable:$false] %s1186_s21 }
  0x21   : > { %s1188_s9 = scalar_lea.vmem %s1187_s21, 1024  ;;  %p1189_p1 = scmp.lt.s32.totalorder %s1380_s22, %s1187_s21 }
  0x22   : > { %p1184_p9 = pnand %p1182_p8, %p1170_p0  ;;  %p1190_p11 = scmp.lt.s32.totalorder %s1188_s9, %s1181_s15 }
  0x24   : > { %p1185_p13 = pneg %p1184_p9  ;;  %p1191_p10 = por %p1190_p11, %p1189_p1 }
  0x26   : > { %p1192_p6 = pnand %p1191_p10, %p1185_p13 }
  0x28   : > { %1195 = shalt.err (!%p1192_p6)
}
  0x29   : > { %s1263_s8 = smov 128   ;;  %s1264_s16 = smov 8  }
  0x2a   : > { %1109 = dma.hbm_to_vmem [thread:$0]  (!%p1376_p12), %s1372_s20, 512, %s1380_s22, %s1382_s29, %s1263_s8, %s1263_s8, %s1264_s16  }
  0x2b   : > { %p1003_p0 = scmp.ge.s32.totalorder %s1260_s27, 1  ;;  %p276_p2 = scmp.lt.s32.totalorder %s1260_s27, 5 }
  0x2d   : > { %p277_p3 = pnand %p1003_p0, %p276_p2 }
  0x2e   : > { %s1406_s17 = sand.u32 (!%p277_p3), 1, %s1252_s25   ;;  %p1766_p6 = scmp.ne.s32.totalorder (!%p277_p3), %s1762_s12, 0 }
  0x2f   : > { %280 = sbr.rel (%p277_p3) target bundleno = 1119 (0x45f), region = 48  ;;  %s1004_s11 = sshll.u32 (!%p277_p3), %s1406_s17, 5 }
  0x30   : > { %s283_s18 = scalar_lea.sflag (!%p277_p3), [#allocation3], %s1406_s17  ;;  %s1412_s15 = scalar_lea.vmem (!%p277_p3), [#allocation2], %s1004_s11 }
  0x34   : > { %1239 = dma.done.wait (%p1766_p6), %s283_s18, 512  }
  0x35   : > { %1241 = vsyncadd (%p1766_p6), %s283_s18, 4294966784  ;;  %p327_p10 = scmp.lt.s32.totalorder %s1331_s28, 3  ;;  %vm355_vm0 = vcmask 261120   ;;  %v347_v2 = vld [vmem:[%s1412_s15] sm:$0xff]  ;;  %v484_v4 = vld [vmem:[%s1754_s3 + $0xf8] sm:$0xff]  ;;  %v1265_v40 = vmov 0.0  }
  0x36   : > { %1088 = vmatprep.mubr.msk.f32.mxu0 %vm355_vm0, %v347_v2  ;;  %497 = vmatprep.subr.mxu1 %v484_v4  ;;  %v483_v5 = vld [vmem:[%s1754_s3 + $0xf0] sm:$0xff]  ;;  %v482_v6 = vld [vmem:[%s1754_s3 + $0xe8] sm:$0xff]  ;;  %v481_v7 = vld [vmem:[%s1754_s3 + $0xe0] sm:$0xff]  ;;  %s1266_s29 = smov 0.0   ;;  %p1767_p12 = scmp.ne.s32.totalorder %s1763_s13, 0 }
  0x37   : > { %s1420_s20 = scalar_select %p327_p10, %s1331_s28, 3  ;;  %498 = vmatpush1.msra.mxu1 %v483_v5  ;;  %v480_v9 = vld [vmem:[%s1754_s3 + $0xd8] sm:$0xff]  ;;  %v479_v10 = vld [vmem:[%s1754_s3 + $0xd0] sm:$0xff]  ;;  %v348_v11 = vld [vmem:[%s1412_s15 + $0x8] sm:$0xff]  ;;  %561 = vmatprep.mubr.f32.mxu1 %v1265_v40 }
  0x38   : > { %499 = vmatprep.subr.mxu1 %v482_v6  ;;  %v478_v12 = vld [vmem:[%s1754_s3 + $0xc8] sm:$0xff]  ;;  %v349_v13 = vld [vmem:[%s1412_s15 + $0x10] sm:$0xff]  ;;  %v477_v14 = vld [vmem:[%s1754_s3 + $0xc0] sm:$0xff] }
  0x39   : > { %s1025_s22 = sshll.u32 %s1420_s20, 5  ;;  %500 = vmatpush1.msra.mxu1 %v481_v7  ;;  %v476_v15 = vld [vmem:[%s1754_s3 + $0xb8] sm:$0xff]  ;;  %v475_v16 = vld [vmem:[%s1754_s3 + $0xb0] sm:$0xff]  ;;  %v474_v18 = vld [vmem:[%s1754_s3 + $0xa8] sm:$0xff] }
  0x3a   : > { %s331_s19 = scalar_lea.vmem %s1751_s0, %s1025_s22  ;;  %501 = vmatprep.subr.mxu1 %v480_v9  ;;  %v350_v17 = vld [vmem:[%s1412_s15 + $0x18] sm:$0xff]  ;;  %v473_v19 = vld [vmem:[%s1754_s3 + $0xa0] sm:$0xff]  ;;  %v471_v21 = vld [vmem:[%s1754_s3 + $0x90] sm:$0xff]  ;;  %s336_s23 = scalar_lea.vmem %s1753_s2, %s1025_s22 }
  0x3b   : > { %v1428_v0 = vld [vmem:[%s331_s19 + $0x18] sm:$0xff]  ;;  %v1430_v1 = vld [vmem:[%s331_s19 + $0x10] sm:$0xff]  ;;  %v1435_v3 = vld [vmem:[%s331_s19 + $0x8] sm:$0xff]  ;;  %502 = vmatpush1.msra.mxu1 %v479_v10 }
  0x3c   : > { %1080 = vmatprep.subr.mxu0 %v1428_v0  ;;  %v1452_v8 = vld [vmem:[%s331_s19] sm:$0xff]  ;;  %503 = vmatprep.subr.mxu1 %v478_v12  ;;  %v472_v20 = vld [vmem:[%s1754_s3 + $0x98] sm:$0xff]  ;;  %v470_v22 = vld [vmem:[%s1754_s3 + $0x88] sm:$0xff] }
  0x3d   : > { %1081 = vmatpush3.msra.mxu0 %v1428_v0  ;;  %504 = vmatpush1.msra.mxu1 %v477_v14  ;;  %v469_v23 = vld [vmem:[%s1754_s3 + $0x80] sm:$0xff]  ;;  %v468_v24 = vld [vmem:[%s1754_s3 + $0x78] sm:$0xff]  ;;  %v467_v25 = vld [vmem:[%s1754_s3 + $0x70] sm:$0xff] }
  0x3e   : > { %1082 = vmatprep.subr.mxu0 %v1430_v1  ;;  %505 = vmatprep.subr.mxu1 %v476_v15  ;;  %v466_v26 = vld [vmem:[%s1754_s3 + $0x68] sm:$0xff]  ;;  %v465_v27 = vld [vmem:[%s1754_s3 + $0x60] sm:$0xff]  ;;  %v464_v28 = vld [vmem:[%s1754_s3 + $0x58] sm:$0xff] }
  0x3f   : > { %1083 = vmatpush3.msra.mxu0 %v1430_v1  ;;  %506 = vmatpush1.msra.mxu1 %v475_v16  ;;  %v463_v29 = vld [vmem:[%s1754_s3 + $0x50] sm:$0xff]  ;;  %v462_v30 = vld [vmem:[%s1754_s3 + $0x48] sm:$0xff]  ;;  %v461_v31 = vld [vmem:[%s1754_s3 + $0x40] sm:$0xff] }
  0x40   : > { %1084 = vmatprep.subr.mxu0 %v1435_v3  ;;  %507 = vmatprep.subr.mxu1 %v474_v18  ;;  %v460_v32 = vld [vmem:[%s1754_s3 + $0x38] sm:$0xff]  ;;  %v459_v33 = vld [vmem:[%s1754_s3 + $0x30] sm:$0xff]  ;;  %v458_v34 = vld [vmem:[%s1754_s3 + $0x28] sm:$0xff] }
  0x41   : > { %1085 = vmatpush3.msra.mxu0 %v1435_v3  ;;  %508 = vmatpush1.msra.mxu1 %v473_v19  ;;  %v457_v35 = vld [vmem:[%s1754_s3 + $0x20] sm:$0xff]  ;;  %v456_v36 = vld [vmem:[%s1754_s3 + $0x18] sm:$0xff]  ;;  %v455_v37 = vld [vmem:[%s1754_s3 + $0x10] sm:$0xff] }
  0x42   : > { %1086 = vmatprep.subr.mxu0 %v1452_v8  ;;  %509 = vmatprep.subr.mxu1 %v472_v20  ;;  %v454_v38 = vld [vmem:[%s1754_s3 + $0x8] sm:$0xff]  ;;  %v453_v39 = vld [vmem:[%s1754_s3] sm:$0xff]  ;;  %v625_v41 = vld [vmem:[%s1756_s5 + $0xf8] sm:$0xff] }
  0x43   : > { %1087 = vmatpush3.msra.mxu0 %v1452_v8  ;;  %510 = vmatpush1.msra.mxu1 %v471_v21  ;;  %v609_v42 = vld [vmem:[%s1756_s5 + $0x78] sm:$0xff]  ;;  %v624_v43 = vld [vmem:[%s1756_s5 + $0xf0] sm:$0xff]  ;;  %v623_v45 = vld [vmem:[%s1756_s5 + $0xe8] sm:$0xff] }
  0x44   : > { %1089 = vmatmul.mubr.msk.f32.vlgmr.msra.gmra.mxu0 %vm355_vm0, %v348_v11  ;;  %511 = vmatprep.subr.mxu1 %v470_v22  ;;  %v608_v44 = vld [vmem:[%s1756_s5 + $0x70] sm:$0xff]  ;;  %v607_v46 = vld [vmem:[%s1756_s5 + $0x68] sm:$0xff]  ;;  %v622_v47 = vld [vmem:[%s1756_s5 + $0xe0] sm:$0xff] }
  0x45   : > { %1091 = vmatprep.mubr.msk.f32.mxu0 %vm355_vm0, %v349_v13  ;;  %512 = vmatpush1.msra.mxu1 %v469_v23  ;;  %v606_v48 = vld [vmem:[%s1756_s5 + $0x60] sm:$0xff]  ;;  %v621_v49 = vld [vmem:[%s1756_s5 + $0xd8] sm:$0xff]  ;;  %v620_v51 = vld [vmem:[%s1756_s5 + $0xd0] sm:$0xff] }
  0x46   : > { %513 = vmatprep.subr.mxu1 %v468_v24  ;;  %1036 = vmatprep.subr.mxu0 %v625_v41  ;;  %v605_v50 = vld [vmem:[%s1756_s5 + $0x58] sm:$0xff]  ;;  %v604_v52 = vld [vmem:[%s1756_s5 + $0x50] sm:$0xff]  ;;  %v619_v53 = vld [vmem:[%s1756_s5 + $0xc8] sm:$0xff] }
  0x47   : > { %514 = vmatpush1.msra.mxu1 %v467_v25  ;;  %1037 = vmatpush3.msra.mxu0 %v609_v42  ;;  %v603_v54 = vld [vmem:[%s1756_s5 + $0x48] sm:$0xff]  ;;  %v618_v55 = vld [vmem:[%s1756_s5 + $0xc0] sm:$0xff]  ;;  %v617_v57 = vld [vmem:[%s1756_s5 + $0xb8] sm:$0xff]  ;;  %v487_v25 = vlaneseq }
  0x48   : > { %1092 = vmatmul.mubr.msk.f32.gmra.mxu0 %vm355_vm0, %v350_v17  ;;  %515 = vmatprep.subr.mxu1 %v466_v26  ;;  %v602_v56 = vld [vmem:[%s1756_s5 + $0x40] sm:$0xff]  ;;  %v601_v58 = vld [vmem:[%s1756_s5 + $0x38] sm:$0xff]  ;;  %v616_v59 = vld [vmem:[%s1756_s5 + $0xb0] sm:$0xff] }
  0x49   : > { %516 = vmatpush1.msra.mxu1 %v465_v27  ;;  %1038 = vmatprep.subr.mxu0 %v624_v43  ;;  %v600_v60 = vld [vmem:[%s1756_s5 + $0x30] sm:$0xff]  ;;  %v615_v61 = vld [vmem:[%s1756_s5 + $0xa8] sm:$0xff]  ;;  %v614_v63 = vld [vmem:[%s1756_s5 + $0xa0] sm:$0xff]  ;;  %v488_v26 = vshrl.u32 %v487_v25, 7 }
  0x4a   : > { %517 = vmatprep.subr.mxu1 %v464_v28  ;;  %1039 = vmatpush3.msra.mxu0 %v608_v44  ;;  %v599_v62 = vld [vmem:[%s1756_s5 + $0x28] sm:$0xff]  ;;  %v598_v2 = vld [vmem:[%s1756_s5 + $0x20] sm:$0xff]  ;;  %v353_v13 = vld [vmem:[%s336_s23 + $0x10] sm:$0xff] }
  0x4b   : > { %518 = vmatpush1.msra.mxu1 %v463_v29  ;;  %1040 = vmatprep.subr.mxu0 %v623_v45  ;;  %v351_v5 = vld [vmem:[%s336_s23] sm:$0xff]  ;;  %v352_v9 = vld [vmem:[%s336_s23 + $0x8] sm:$0xff]  ;;  %v354_v15 = vld [vmem:[%s336_s23 + $0x18] sm:$0xff]  ;;  %v1653_v27 = vsub.s32 0, %v488_v26  ;;  %v493_v29 = vsub.s32 1, %v488_v26 }
  0x4c   : > { %519 = vmatprep.subr.mxu1 %v462_v30  ;;  %1041 = vmatpush3.msra.mxu0 %v607_v46  ;;  %v613_v17 = vld [vmem:[%s1756_s5 + $0x98] sm:$0xff]  ;;  %v612_v19 = vld [vmem:[%s1756_s5 + $0x90] sm:$0xff]  ;;  %v611_v21 = vld [vmem:[%s1756_s5 + $0x88] sm:$0xff] }
  0x4d   : > { %520 = vmatpush1.msra.mxu1 %v461_v31  ;;  %1042 = vmatprep.subr.mxu0 %v622_v47  ;;  %v597_v18 = vld [vmem:[%s1756_s5 + $0x18] sm:$0xff]  ;;  %v596_v20 = vld [vmem:[%s1756_s5 + $0x10] sm:$0xff]  ;;  %v595_v22 = vld [vmem:[%s1756_s5 + $0x8] sm:$0xff] }
  0x4e   : > { %521 = vmatprep.subr.mxu1 %v460_v32  ;;  %1043 = vmatpush3.msra.mxu0 %v606_v48  ;;  %v610_v23 = vld [vmem:[%s1756_s5 + $0x80] sm:$0xff] }
  0x4f   : > { %522 = vmatpush1.msra.mxu1 %v459_v33  ;;  %1044 = vmatprep.subr.mxu0 %v621_v49  ;;  %v594_v24 = vld [vmem:[%s1756_s5] sm:$0xff] }
  0x50   : > { %523 = vmatprep.subr.mxu1 %v458_v34  ;;  %1045 = vmatpush3.msra.mxu0 %v605_v50  ;;  %v485_v28 = vld [vmem:[%s1755_s4] sm:$0x3] }
  0x51   : > { %524 = vmatpush1.msra.mxu1 %v457_v35  ;;  %1046 = vmatprep.subr.mxu0 %v620_v51  ;;  %v490_v30 = vrot.slane %v485_v28, %v1653_v27  ;;  %v494_v31 = vrot.slane %v485_v28, %v493_v29 }
  0x52   : > { %525 = vmatprep.subr.mxu1 %v456_v36  ;;  %1047 = vmatpush3.msra.mxu0 %v604_v52 }
  0x53   : > { %526 = vmatpush1.msra.mxu1 %v455_v37  ;;  %1048 = vmatprep.subr.mxu0 %v619_v53 }
  0x54   : > { %527 = vmatprep.subr.mxu1 %v454_v38  ;;  %1049 = vmatpush3.msra.mxu0 %v603_v54 }
  0x55   : > { %528 = vmatpush1.msra.mxu1 %v453_v39  ;;  %1050 = vmatprep.subr.mxu0 %v618_v55 }
  0x56   : > { %1051 = vmatpush3.msra.mxu0 %v602_v56 }
  0x57   : > { %1052 = vmatprep.subr.mxu0 %v617_v57 }
  0x58   : > { %1053 = vmatpush3.msra.mxu0 %v601_v58 }
  0x59   : > { %1054 = vmatprep.subr.mxu0 %v616_v59 }
  0x5a   : > { %1055 = vmatpush3.msra.mxu0 %v600_v60 }
  0x5b   : > { %1056 = vmatprep.subr.mxu0 %v615_v61 }
  0x5c   : > { %1057 = vmatpush3.msra.mxu0 %v599_v62 }
  0x5d   : > { %1058 = vmatprep.subr.mxu0 %v614_v63  ;;  %v1014_v63 = vld [vmem:[%s1757_s6] ss:$0 sm:$0xff] }
  0x5e   : > { %1059 = vmatpush3.msra.mxu0 %v598_v2 }
  0x5f   : > { %1060 = vmatprep.subr.mxu0 %v613_v17 }
  0x60   : > { %1061 = vmatpush3.msra.mxu0 %v597_v18 }
  0x61   : > { %1062 = vmatprep.subr.mxu0 %v612_v19 }
  0x62   : > { %1063 = vmatpush3.msra.mxu0 %v596_v20 }
  0x63   : > { %1064 = vmatprep.subr.mxu0 %v611_v21 }
  0x64   : > { %1065 = vmatpush3.msra.mxu0 %v595_v22 }
  0x65   : > { %1066 = vmatprep.subr.mxu0 %v610_v23 }
  0x66   : > { %1067 = vmatpush3.msra.mxu0 %v594_v24 }
 0x104   : > { %v1090_v4 = vpop.f32.mrf.mxu0 }
 0x105   : > { %v440_v11 = vadd.f32 %v1090_v4, %v352_v9 }
 0x106   : > { %v434_v6 = vpop.f32.mrf.mxu0 }
 0x107   : > { %v435_v7 = vadd.f32 %v434_v6, %v351_v5 }
 0x108   : > { %v1093_v10 = vpop.f32.mrf.mxu0 }
 0x109   : > { %562 = vmatmul.mubr.f32.vlgmr.msra.gmra.mxu1 %v435_v7  ;;  %v450_v16 = vadd.f32 %v1093_v10, %v354_v15 }
 0x10a   : > { %567 = vmatprep.mubr.f32.mxu1 %v1265_v40  ;;  %v444_v12 = vpop.f32.mrf.mxu0 }
 0x10b   : > { %v445_v14 = vadd.f32 %v444_v12, %v353_v13 }
 0x10d   : > { %568 = vmatmul.mubr.f32.gmra.mxu1 %v440_v11 }
 0x10e   : > { %573 = vmatprep.mubr.f32.mxu1 %v1265_v40 }
 0x111   : > { %574 = vmatmul.mubr.f32.gmra.mxu1 %v445_v14 }
 0x112   : > { %579 = vmatprep.mubr.f32.mxu1 %v1265_v40 }
 0x115   : > { %580 = vmatmul.mubr.f32.gmra.mxu1 %v450_v16 }
 0x1c9   : > { %v563_v32 = vpop.f32.mrf.mxu1 }
 0x1ca   : > { %v564_v33 = vadd.f32 %v563_v32, %v490_v30 }
 0x1cb   : > { %v565_v34 = vpop.f32.mrf.mxu1 }
 0x1cc   : > { %v566_v35 = vadd.f32 %v565_v34, %v494_v31  ;;  %v586_v38 = vmax.f32 %v564_v33, 0.0 }
 0x1cd   : > { %v569_v36 = vpop.f32.mrf.mxu1 }
 0x1ce   : > { %v587_v37 = vmax.f32 %v566_v35, 0.0  ;;  %v570_v39 = vadd.f32 %v569_v36, %v490_v30 }
 0x1cf   : > { %v571_v40 = vpop.f32.mrf.mxu1 }
 0x1d0   : > { %v572_v41 = vadd.f32 %v571_v40, %v494_v31  ;;  %694 = vmatprep.mubr.f32.mxu0 %v587_v37  ;;  %v588_v44 = vmax.f32 %v570_v39, 0.0 }
 0x1d1   : > { %v575_v42 = vpop.f32.mrf.mxu1  ;;  %695 = vmatmul.mubr.f32.vlgmr.msra.gmra.mxu0 %v586_v38 }
 0x1d2   : > { %v589_v43 = vmax.f32 %v572_v41, 0.0  ;;  %v576_v45 = vadd.f32 %v575_v42, %v490_v30 }
 0x1d3   : > { %v577_v46 = vpop.f32.mrf.mxu1 }
 0x1d4   : > { %v578_v47 = vadd.f32 %v577_v46, %v494_v31  ;;  %699 = vmatprep.mubr.f32.mxu0 %v589_v43  ;;  %v590_v50 = vmax.f32 %v576_v45, 0.0 }
 0x1d5   : > { %v581_v48 = vpop.f32.mrf.mxu1  ;;  %700 = vmatmul.mubr.f32.gmra.mxu0 %v588_v44 }
 0x1d6   : > { %v591_v49 = vmax.f32 %v578_v47, 0.0  ;;  %v582_v51 = vadd.f32 %v581_v48, %v490_v30 }
 0x1d7   : > { %v583_v52 = vpop.f32.mrf.mxu1 }
 0x1d8   : > { %v584_v53 = vadd.f32 %v583_v52, %v494_v31  ;;  %704 = vmatprep.mubr.f32.mxu0 %v591_v49  ;;  %v592_v55 = vmax.f32 %v582_v51, 0.0  ;;  %v1015_v51 = vld [vmem:[%s1757_s6 + $0x1] ss:$0 sm:$0xff] }
 0x1d9   : > { %705 = vmatmul.mubr.f32.gmra.mxu0 %v590_v50 }
 0x1da   : > { %v593_v54 = vmax.f32 %v584_v53, 0.0 }
 0x1dc   : > { %709 = vmatprep.mubr.f32.mxu0 %v593_v54 }
 0x1dd   : > { %710 = vmatmul.mubr.f32.gmra.mxu0 %v592_v55 }
 0x291   : > { %v1068_v56 = vpop.f32.mrf.mxu0 }
 0x293   : > { %v1069_v57 = vpop.f32.mrf.mxu0 }
 0x294   : > { %v1070_v62 = vadd.f32 %v1069_v57, %v1068_v56  ;;  %v1016_v57 = vld [vmem:[%s1757_s6 + $0x2] ss:$0 sm:$0xff] }
 0x295   : > { %v1071_v58 = vpop.f32.mrf.mxu0 }
 0x296   : > { %v1664_v7 = vadd.f32 %v1070_v62, %v1014_v63 }
 0x297   : > { %v1072_v59 = vpop.f32.mrf.mxu0 }
 0x298   : > { %v1073_v60 = vadd.f32 %v1072_v59, %v1071_v58  ;;  %v730_v14 = vmul.f32 %v1664_v7, %v1664_v7 }
 0x299   : > { %v1074_v61 = vpop.f32.mrf.mxu0 }
 0x29a   : > { %v1662_v4 = vadd.f32 %v1073_v60, %v1014_v63 }
 0x29b   : > { %v1075_v2 = vpop.f32.mrf.mxu0 }
 0x29c   : > { %v1076_v5 = vadd.f32 %v1075_v2, %v1074_v61  ;;  %v731_v11 = vmul.f32 %v1662_v4, %v1662_v4  ;;  %v715_v13 = vadd.f32 %v1662_v4, %v1664_v7 }
 0x29d   : > { %v1077_v6 = vpop.f32.mrf.mxu0 }
 0x29e   : > { %v1666_v9 = vadd.f32 %v1076_v5, %v1014_v63  ;;  %v734_v20 = vadd.f32 %v731_v11, %v730_v14 }
 0x29f   : > { %v1078_v10 = vpop.f32.mrf.mxu0 }
 0x2a0   : > { %v1079_v12 = vadd.f32 %v1078_v10, %v1077_v6  ;;  %v716_v16 = vadd.f32 %v715_v13, %v1666_v9  ;;  %v732_v17 = vmul.f32 %v1666_v9, %v1666_v9 }
 0x2a2   : > { %v712_v15 = vadd.f32 %v1079_v12, %v1014_v63  ;;  %v735_v21 = vadd.f32 %v734_v20, %v732_v17 }
 0x2a4   : > { %v717_v18 = vadd.f32 %v716_v16, %v712_v15  ;;  %v733_v19 = vmul.f32 %v712_v15, %v712_v15 }
 0x2a6   : > { %718 = vadd.xlane.f32.xlu0 %v717_v18  ;;  %v736_v22 = vadd.f32 %v735_v21, %v733_v19  ;;  %v344_v19 = vld [vmem:[%s1757_s6 + $0x3] sm:$0x1] }
 0x2aa   : > { %737 = vadd.xlane.f32.xlu0 %v736_v22 }
 0x32f   : > { %v719_v23 = vpop.xlane.xlu0 %718 }
 0x330   : > { %v720_v24 = vrot.slane %v719_v23, 4 }
 0x332   : > { %v721_v25 = vadd.f32 %v720_v24, %v719_v23  ;;  %v825_v24 = vmul.f32 2.0, %v344_v19 }
 0x333   : > { %v738_v26 = vpop.xlane.xlu0 %737 }
 0x334   : > { %v722_v28 = vrot.slane %v721_v25, 2  ;;  %v739_v29 = vrot.slane %v738_v26, 4 }
 0x336   : > { %v740_v30 = vadd.f32 %v739_v29, %v738_v26  ;;  %v723_v31 = vadd.f32 %v722_v28, %v721_v25  ;;  %v826_v25 = vmul.f32 %v344_v19, %v344_v19 }
 0x338   : > { %v741_v32 = vrot.slane %v740_v30, 2  ;;  %v724_v33 = vrot.slane %v723_v31, 1 }
 0x33a   : > { %v742_v34 = vadd.f32 %v741_v32, %v740_v30  ;;  %v725_v35 = vadd.f32 %v724_v33, %v723_v31  ;;  %v827_v31 = vsub.f32 %v825_v24, %v826_v25 }
 0x33c   : > { %1094 = vpush %v725_v35  ;;  %v743_v36 = vrot.slane %v742_v34, 1 }
 0x33e   : > { %v744_v37 = vadd.f32 %v743_v36, %v742_v34 }
 0x340   : > { %1096 = vpush %v744_v37 }
 0x36d   : > { %s1095_s16 = spop %1094 }
 0x36e   : > { %s729_s19 = smul.f32 0.00024414063, %s1095_s16 }
 0x370   : > { %s749_s18 = smul.f32 %s729_s19, %s729_s19  ;;  %v752_v46 = vstv %s729_s19  ;;  %s1267_s19 = smov [#allocation5]  }
 0x371   : > { %s1097_s23 = spop %1096  ;;  %v753_v47 = vsub.f32 %v1664_v7, %v752_v46  ;;  %v754_v48 = vsub.f32 %v1662_v4, %v752_v46  ;;  %v755_v49 = vsub.f32 %v1666_v9, %v752_v46  ;;  %v756_v50 = vsub.f32 %v712_v15, %v752_v46 }
 0x372   : > { %s748_s20 = smul.f32 0.00024414063, %s1097_s23 }
 0x374   : > { %s750_s22 = ssub.f32 %s748_s20, %s749_s18  ;;  %s1200_s20 = sshll.u32 %s1267_s19, 4  ;;  %s1201_s20 = int_to_ptr.vmem [resolvable:$false] %s1200_s20 }
 0x376   : > { %s751_s12 = smax.f32 %s1266_s29, %s750_s22  ;;  %s1202_s22 = scalar_lea.vmem %s1201_s20, 1024 }
 0x377   : > { %v757_v38 = vstv %s751_s12 }
 0x378   : > { %1154 = vrsqrt.f32 %v757_v38  ;;  %vm760_vm1 = vcmp.eq.f32.partialorder %v757_v38, inf  ;;  %v763_v41 = vand.u32 2147483648, %v757_v38  ;;  %vm762_vm2 = vcmp.eq.f32.partialorder %v757_v38, 0.0 }
 0x385   : > { %v1155_v39 = vpop.eup %1154 }
 0x386   : > { %v759_v40 = vmul.f32 %v1155_v39, %v757_v38 }
 0x388   : > { %v761_v42 = vsel %vm760_vm1, %v757_v38, %v759_v40 }
 0x389   : > { %v764_v43 = vsel %vm762_vm2, %v763_v41, %v761_v42 }
 0x38a   : > { %1098 = vpush %v764_v43  ;;  %v1017_v43 = vld [vmem:[%s1757_s6 + $0x4] ss:$0 sm:$0xff] }
 0x3bb   : > { %s1099_s15 = spop %1098 }
 0x3bc   : > { %s766_s21 = sadd.f32 1e-05, %s1099_s15 }
 0x3be   : > { %v767_v44 = vstv %s766_s21  ;;  %s1027_s21 = sshll.u32 %s1331_s28, 9  ;;  %s887_s28 = scalar_lea.sflag [#allocation4], %s1406_s17 }
 0x3bf   : > { %1156 = vrcp.f32 %v767_v44  ;;  %s1706_s23 = scalar_lea.hbm %s1758_s7, %s1027_s21 }
 0x3cc   : > { %v1157_v45 = vpop.eup %1156 }
 0x3cd   : > { %1100 = vpush %v1157_v45 }
 0x3fe   : > { %s1101_s9 = spop %1100 }
 0x3ff   : > { %v770_v52 = vstv %s1101_s9  ;;  %s326_s9 = scalar_lea.vmem [#allocation5], %s1004_s11 }
 0x400   : > { %v771_v53 = vmul.f32 %v770_v52, %v753_v47  ;;  %v772_v54 = vmul.f32 %v770_v52, %v754_v48  ;;  %v773_v55 = vmul.f32 %v770_v52, %v755_v49  ;;  %v774_v56 = vmul.f32 %v770_v52, %v756_v50  ;;  %s900_s8 = sshll.u32 %s326_s9, 4  ;;  %s1708_s8 = int_to_ptr.vmem [resolvable:$true] %s900_s8 }
 0x401   : > { %s1196_s11 = scalar_lea.vmem %s1708_s8, 512  ;;  %p1203_p7 = scmp.lt.s32.totalorder %s1708_s8, %s1201_s20 }
 0x402   : > { %v779_v58 = vmul.f32 %v1015_v51, %v771_v53  ;;  %v780_v59 = vmul.f32 %v1015_v51, %v772_v54  ;;  %v781_v60 = vmul.f32 %v1015_v51, %v773_v55  ;;  %v782_v61 = vmul.f32 %v1015_v51, %v774_v56  ;;  %v1018_v53 = vld [vmem:[%s1757_s6 + $0x5] ss:$0 sm:$0xff]  ;;  %p1197_p11 = scmp.ne.s32.totalorder %s1708_s8, %s1196_s11  ;;  %p1204_p8 = scmp.lt.s32.totalorder %s1202_s22, %s1196_s11 }
 0x404   : > { %v787_v62 = vadd.f32 %v1016_v57, %v779_v58  ;;  %v788_v63 = vadd.f32 %v1016_v57, %v780_v59  ;;  %v789_v2 = vadd.f32 %v1016_v57, %v781_v60  ;;  %v790_v4 = vadd.f32 %v1016_v57, %v782_v61  ;;  %p1198_p4 = pnand %p1197_p11, %p1767_p12  ;;  %p1205_p9 = por %p1204_p8, %p1203_p7 }
 0x406   : > { %v791_v5 = vadd.f32 %v788_v63, %v787_v62  ;;  %v802_v6 = vmul.f32 %v787_v62, %v787_v62  ;;  %v803_v7 = vmul.f32 %v788_v63, %v788_v63  ;;  %v804_v10 = vmul.f32 %v789_v2, %v789_v2  ;;  %p1199_p5 = pneg %p1198_p4 }
 0x407   : > { %v805_v13 = vmul.f32 %v790_v4, %v790_v4 }
 0x408   : > { %v792_v9 = vadd.f32 %v791_v5, %v789_v2  ;;  %v806_v11 = vadd.f32 %v803_v7, %v802_v6  ;;  %p1206_p13 = pnand %p1205_p9, %p1199_p5 }
 0x40a   : > { %v793_v12 = vadd.f32 %v792_v9, %v790_v4  ;;  %v807_v14 = vadd.f32 %v806_v11, %v804_v10 }
 0x40c   : > { %v794_v15 = vrot.slane %v793_v12, 4  ;;  %v808_v16 = vadd.f32 %v807_v14, %v805_v13 }
 0x40e   : > { %v795_v17 = vadd.f32 %v794_v15, %v793_v12  ;;  %v809_v18 = vrot.slane %v808_v16, 4 }
 0x410   : > { %v796_v20 = vrot.slane %v795_v17, 2  ;;  %v810_v21 = vadd.f32 %v809_v18, %v808_v16 }
 0x412   : > { %v797_v22 = vadd.f32 %v796_v20, %v795_v17  ;;  %v811_v23 = vrot.slane %v810_v21, 2 }
 0x414   : > { %v798_v26 = vrot.slane %v797_v22, 1  ;;  %v812_v28 = vadd.f32 %v811_v23, %v810_v21 }
 0x416   : > { %v799_v29 = vadd.f32 %v798_v26, %v797_v22  ;;  %v813_v30 = vrot.slane %v812_v28, 1 }
 0x418   : > { %v801_v32 = vmul.f32 0.03125, %v799_v29  ;;  %v814_v33 = vadd.f32 %v813_v30, %v812_v28 }
 0x41a   : > { %v828_v34 = vmul.f32 %v827_v31, %v801_v32  ;;  %v815_v36 = vmul.f32 0.03125, %v814_v33  ;;  %v816_v40 = vmul.f32 %v801_v32, %v344_v19 }
 0x41c   : > { %v829_v35 = vmul.f32 %v828_v34, %v801_v32  ;;  %v820_v41 = vrot.slane %v816_v40, %v1653_v27 }
 0x41e   : > { %v830_v37 = vsub.f32 %v815_v36, %v829_v35  ;;  %v821_v42 = vsub.f32 %v787_v62, %v820_v41  ;;  %v822_v44 = vsub.f32 %v788_v63, %v820_v41  ;;  %v823_v45 = vsub.f32 %v789_v2, %v820_v41 }
 0x41f   : > { %v824_v46 = vsub.f32 %v790_v4, %v820_v41 }
 0x420   : > { %v831_v38 = vmax.f32 %v830_v37, 0.0  ;;  %v836_v48 = vmul.f32 %v1017_v43, %v821_v42  ;;  %v837_v49 = vmul.f32 %v1017_v43, %v822_v44  ;;  %v838_v50 = vmul.f32 %v1017_v43, %v823_v45 }
 0x421   : > { %v839_v51 = vmul.f32 %v1017_v43, %v824_v46 }
 0x422   : > { %v840_v39 = vadd.f32 1e-05, %v831_v38 }
 0x424   : > { %1158 = vrsqrt.f32 %v840_v39 }
 0x431   : > { %v1159_v47 = vpop.eup %1158 }
 0x432   : > { %v845_v52 = vrot.slane %v1159_v47, %v1653_v27 }
 0x434   : > { %v846_v54 = vmul.f32 %v845_v52, %v836_v48  ;;  %v847_v55 = vmul.f32 %v845_v52, %v837_v49  ;;  %v848_v56 = vmul.f32 %v845_v52, %v838_v50  ;;  %v849_v57 = vmul.f32 %v845_v52, %v839_v51 }
 0x436   : > { %v854_v58 = vadd.f32 %v1018_v53, %v846_v54  ;;  %v855_v59 = vadd.f32 %v1018_v53, %v847_v55  ;;  %v856_v60 = vadd.f32 %v1018_v53, %v848_v56  ;;  %v857_v61 = vadd.f32 %v1018_v53, %v849_v57 }
 0x438   : > { %v862_v62 = vmul.f32 0.70710677, %v854_v58  ;;  %v863_v63 = vmul.f32 0.70710677, %v855_v59  ;;  %v864_v2 = vmul.f32 0.70710677, %v856_v60 }
 0x439   : > { %v865_v4 = vmul.f32 0.70710677, %v857_v61  ;;  %v858_v6 = vmul.f32 0.5, %v854_v58  ;;  %v859_v10 = vmul.f32 0.5, %v855_v59  ;;  %v860_v13 = vmul.f32 0.5, %v856_v60 }
 0x43a   : > { %1160 = verf.f32 %v862_v62  ;;  %v861_v16 = vmul.f32 0.5, %v857_v61 }
 0x43b   : > { %1162 = verf.f32 %v863_v63 }
 0x43c   : > { %1164 = verf.f32 %v864_v2 }
 0x43d   : > { %1166 = verf.f32 %v865_v4 }
 0x447   : > { %v1161_v27 = vpop.eup %1160 }
 0x448   : > { %v1163_v5 = vpop.eup %1162  ;;  %v870_v7 = vadd.f32 1.0, %v1161_v27 }
 0x449   : > { %v1165_v9 = vpop.eup %1164  ;;  %v871_v11 = vadd.f32 1.0, %v1163_v5 }
 0x44a   : > { %v1167_v12 = vpop.eup %1166  ;;  %v872_v14 = vadd.f32 1.0, %v1165_v9  ;;  %v874_v15 = vmul.f32 %v870_v7, %v858_v6 }
 0x44b   : > { %v873_v17 = vadd.f32 1.0, %v1167_v12  ;;  %v875_v18 = vmul.f32 %v871_v11, %v859_v10 }
 0x44c   : > { %v876_v19 = vmul.f32 %v872_v14, %v860_v13  ;;  %v878_v20 = vadd.f32 %v874_v15, %v1452_v8 }
 0x44d   : > { %v877_v21 = vmul.f32 %v873_v17, %v861_v16  ;;  %v879_v22 = vadd.f32 %v875_v18, %v1435_v3 }
 0x44e   : > { %v880_v23 = vadd.f32 %v876_v19, %v1430_v1  ;;  %882 = vst [vmem:[%s326_s9] sm:$0xff] %v878_v20 }
 0x44f   : > { %v881_v24 = vadd.f32 %v877_v21, %v1428_v0  ;;  %883 = vst [vmem:[%s326_s9 + $0x8] sm:$0xff] %v879_v22 }
 0x450   : > { %884 = vst [vmem:[%s326_s9 + $0x10] sm:$0xff] %v880_v23 }
 0x451   : > { %885 = vst [vmem:[%s326_s9 + $0x18] sm:$0xff] %v881_v24 }
 0x452   : > { %1209 = shalt.err (!%p1206_p13)
}
 0x453   : > { %s1210_s29 = scalar_lea.hbm %s1706_s23, 512  ;;  %s1214_s21 = scalar_lea.hbm %s1758_s7, 2048 }
 0x454   : > { %p1211_p1 = scmp.ne.s32.totalorder %s1706_s23, %s1210_s29  ;;  %p1215_p3 = scmp.lt.s32.totalorder %s1706_s23, %s1758_s7 }
 0x455   : > { %p1216_p6 = scmp.lt.s32.totalorder %s1214_s21, %s1210_s29 }
 0x456   : > { %p1212_p0 = pnand %p1211_p1, %p1767_p12 }
 0x457   : > { %p1217_p10 = por %p1216_p6, %p1215_p3 }
 0x458   : > { %p1213_p2 = pneg %p1212_p0 }
 0x45a   : > { %p1218_p11 = pnand %p1217_p10, %p1213_p2 }
 0x45c   : > { %1221 = shalt.err (!%p1218_p11)
}
 0x45d   : > { %s1268_s18 = smov 128   ;;  %s1269_s11 = smov 8  }
 0x45e   : > { %1104 = dma.vmem_to_hbm [thread:$0]  (%p1767_p12), %s1708_s8, 512, %s1706_s23, %s887_s28, %s1268_s18, %s1268_s18, %s1269_s11  }
 0x45f PF: > { %p1115_p4 = scmp.ge.s32.totalorder %s1260_s27, 2  ;;  %s915_s19 = sand.u32 1, %s1248_s24  }
 0x460   : > { %p1768_p5 = scmp.ne.s32.totalorder %s1764_s14, 0  ;;  %s916_s20 = scalar_lea.sflag [#allocation4], %s915_s19 }
 0x462   : > { %p1111_p7 = pnand %p1115_p4, %p1768_p5 }
 0x464   : > { %p1112_p8 = pneg %p1111_p7 }
 0x466   : > { %1243 = dma.done.wait (%p1112_p8), %s916_s20, 512  }
 0x467   : > { %1245 = vsyncadd (%p1112_p8), %s916_s20, 4294966784  ;;  %p20_p9 = scmp.ge.s32.totalorder %s1335_s30, 6   ;;  %s1769_s24 = smov %s1252_s25 }
 0x468   : > { %s1770_s25 = smov %s1256_s26  ;;  %s1771_s26 = smov %s1347_s10 }
 0x469   : > { %s1772_s27 = smov %s1335_s30  ;;  %22 = sbr.rel (!%p20_p9) target bundleno = 5 (0x5), region = 99 }
 0x46e   :  { %921 = vsyncpa [#allocation3], 1 }
 0x46f   :  { %923 = vsyncpa [#allocation3 + $0x1], 1 }
 0x470   :  { %924 = vsyncpa [#allocation4], 1 }
 0x471   :  { %926 = vsyncpa [#allocation4 + $0x1], 1 }

</bundles_post_ra>
